<compile_context>
chip_gen: v7x
topology: tpu7x:2x2x1
jax: 0.10.0
libtpu: 0.0.40
codegen_flags: <defaults>
</compile_context>

<pallas_src>
import jax
import jax.numpy as jnp
from jax import lax
from jax.experimental import pallas as pl
from jax.experimental.pallas import tpu as pltpu

KERNEL_SIZE = 7


def _round_up(v, m):
    return (v + m - 1) // m * m


# ----------------------------------------------------------------------------
# Hardware-aware configuration
# ----------------------------------------------------------------------------
def _tpu_config():
    """Generation-aware (block budget, vmem_limit cap, TensorCore count)."""
    cap = 128 << 20
    try:
        cap = int(pltpu.get_tpu_info().vmem_capacity_bytes)
    except Exception:
        pass
    n_tc = 1
    try:
        kind = jax.devices()[0].device_kind.lower()
        if any(t in kind for t in ("v7", "v5p", "v4")):
            n_tc = 2                       # two TensorCores behind one device
    except Exception:
        pass
    if cap <= (72 << 20):                  # v7x-class: 64 MiB VMEM per TC
        budget, limit_cap = 36 << 20, 48 << 20
    else:                                  # v5e / v6e: 128 MiB VMEM
        budget, limit_cap = 80 << 20, 100 << 20
    limit_cap = min(limit_cap, max(32 << 20, cap - (8 << 20)))
    return budget, limit_cap, n_tc


# ----------------------------------------------------------------------------
# Unified VMEM accounting (used by the tile pickers AND the vmem limits)
# ----------------------------------------------------------------------------
def _reduce_vmem_bytes(nb, C, hwt):
    Cp = _round_up(C, 8)
    hp = _round_up(hwt, 128)
    in_blk = nb * Cp * hp * 4
    out_blk = nb * 8 * hp * 4              # the 2-row output tile pads to 8 sublanes
    work = in_blk + 8 * _round_up(nb, 8) * hp * 4
    return 2 * in_blk + 2 * out_blk + work          # double-buffered in & out


def _conv_vmem_bytes(nb, H, W, pad):
    Hp, Wp = _round_up(H, 8), _round_up(W, 128)
    Ha, Wa = _round_up(H + pad, 8), _round_up(W + pad, 128)
    in_blk = nb * 2 * Hp * Wp * 4
    out_blk = nb * 1 * Hp * Wp * 4
    work = 20 * nb * Ha * Wa * 4           # folded maps, rolled copies, row chains
    return 2 * in_blk + 2 * out_blk + work


# ----------------------------------------------------------------------------
# Tile pickers
# ----------------------------------------------------------------------------
def _pick_reduce_tiles(N, C, HW, budget, n_tc):
    Cp = _round_up(C, 8)
    HWp = _round_up(HW, 128)
    # HBM streaming plateaus past ~1-4 MiB f32 tiles; a few MiB per input block
    # is enough, the rest of the generation budget stays as headroom.
    target = max(2 << 20, min(8 << 20, budget // 8))

    def in_bytes(nb, hwt):
        return nb * Cp * _round_up(hwt, 128) * 4

    if in_bytes(1, HW) <= target:
        hwt = HW
        nb = max(1, min(N, target // in_bytes(1, HW)))
    else:
        nb = 1
        hwt = max(128, (target // (Cp * 4)) // 128 * 128)
        if hwt >= HW:
            hwt = HW

    if n_tc >= 2:                          # keep both TensorCores busy (v7x)
        steps = pl.cdiv(N, nb) * pl.cdiv(HW, hwt)
        if steps < n_tc:
            if N >= 2:
                nb = pl.cdiv(N, n_tc)
            elif HW > 128 and HWp >= 128 * n_tc:
                hwt = max(128, _round_up(pl.cdiv(HW, n_tc), 128))
        elif pl.cdiv(N, nb) > 1 and pl.cdiv(N, nb) % n_tc:
            for cand in range(nb - 1, 0, -1):      # prefer an even step count
                if pl.cdiv(N, cand) % n_tc == 0:
                    nb = cand
                    break
    return nb, hwt


def _pick_conv_tiles(N, H, W, pad, budget, n_tc):
    per = max(1, _conv_vmem_bytes(1, H, W, pad))
    nb = max(1, min(N, budget // per))
    while nb > 1 and _conv_vmem_bytes(nb, H, W, pad) > budget:
        nb -= 1
    if n_tc >= 2 and N >= 2:
        nb = min(nb, pl.cdiv(N, n_tc))     # >= 1 step per TensorCore
    return nb


# ----------------------------------------------------------------------------
# Kernels
# ----------------------------------------------------------------------------
def _make_reduce_kernel(C):
    """Fused channel mean+max over the sublane (channel) axis of an
    (nb, C, hw_tile) block; the spatial axis is lane-dense."""
    inv_c = 1.0 / C
    C8 = (C // 8) * 8              # sublane-tile-aligned bulk; tail via indexing

    def kernel(x_ref, o_ref):
        if C8 >= 8:
            xb = x_ref[:, :C8, :]                  # tile-aligned view, zero cost
            s = jnp.sum(xb, axis=1)
            m = jnp.max(xb, axis=1)
            tail = range(C8, C)
        else:
            x0 = x_ref[:, 0, :]
            s, m = x0, x0
            tail = range(1, C)
        for c in tail:                             # <= 7 leftover channels
            xc = x_ref[:, c, :]
            s = s + xc
            m = jnp.maximum(m, xc)
        o_ref[:, 0, :] = s * inv_c                 # sum * (1/C): f32 mean
        o_ref[:, 1, :] = m

    return kernel


def _make_conv_sigmoid_kernel(K, pad):
    def kernel(w_ref, y_ref, o_ref):
        nb, _, H, W = y_ref.shape
        Ha = _round_up(H + pad, 8)
        Wa = _round_up(W + pad, 128)
        R = nb * Ha

        avg = y_ref[:, 0, :, :]
        mx = y_ref[:, 1, :, :]
        # (8,128)-aligned zero-margin maps, batch folded onto the sublane axis;
        # every slot keeps >= pad zero rows/cols after its data, so the modular
        # rolls below reproduce Conv2d's zero padding exactly (wrapped reads
        # always land on zeros, including across folded batch-slot boundaries).
        pa = jnp.pad(avg, ((0, 0), (0, Ha - H), (0, Wa - W))).reshape(R, Wa)
        pm = jnp.pad(mx, ((0, 0), (0, Ha - H), (0, Wa - W))).reshape(R, Wa)

        # conv weights: each SMEM scalar read exactly once, hoisted out of loops
        w_avg = [[w_ref[0 * K * K + dy * K + dx] for dx in range(K)] for dy in range(K)]
        w_max = [[w_ref[1 * K * K + dy * K + dx] for dx in range(K)] for dy in range(K)]

        # KxK conv as rolls + scalar-weighted adds: one lane roll per dx (XLU),
        # reused by every dy; rows[dy] are K independent accumulation chains.
        rows = [None] * K
        for dx in range(K):
            sh = (pad - dx) % Wa
            a_s = pa if sh == 0 else pltpu.roll(pa, sh, 1)
            m_s = pm if sh == 0 else pltpu.roll(pm, sh, 1)
            for dy in range(K):
                contrib = w_avg[dy][dx] * a_s + w_max[dy][dx] * m_s
                rows[dy] = contrib if rows[dy] is None else rows[dy] + contrib

        # one sublane roll per dy, then a short pairwise tree-sum
        parts = []
        for dy in range(K):
            sh = (pad - dy) % R
            parts.append(rows[dy] if sh == 0 else pltpu.roll(rows[dy], sh, 0))
        while len(parts) > 1:
            nxt = []
            for i in range(0, len(parts), 2):
                nxt.append(parts[i] + parts[i + 1] if i + 1 < len(parts) else parts[i])
            parts = nxt
        acc = parts[0]                              # (R, Wa) f32

        out = jax.nn.sigmoid(acc.reshape(nb, Ha, Wa)[:, :H, :W])
        o_ref[:, 0, :, :] = out

    return kernel


# ----------------------------------------------------------------------------
# Wrapper
# ----------------------------------------------------------------------------
def spatial_attention(x, conv_weight):
    """x: (N, C, H, W);  conv_weight: (1, 2, K, K)  ->  (N, 1, H, W) float32."""
    x = x.astype(jnp.float32)
    N, C, H, W = x.shape
    K = int(conv_weight.shape[-1])
    pad = K // 2
    HW = H * W
    w_flat = conv_weight.astype(jnp.float32).reshape(-1)      # (2*K*K,)

    budget, limit_cap, n_tc = _tpu_config()

    # ---- phase 1: lane-dense fused channel mean+max over x viewed as (N, C, H*W)
    nb, hwt = _pick_reduce_tiles(N, C, HW, budget, n_tc)
    am = pl.pallas_call(
        _make_reduce_kernel(C),
        out_shape=jax.ShapeDtypeStruct((N, 2, HW), jnp.float32),
        grid=(pl.cdiv(N, nb), pl.cdiv(HW, hwt)),
        in_specs=[pl.BlockSpec((nb, C, hwt), lambda n, h: (n, 0, h))],
        out_specs=pl.BlockSpec((nb, 2, hwt), lambda n, h: (n, 0, h)),
        compiler_params=pltpu.CompilerParams(
            dimension_semantics=("parallel", "parallel"),
            vmem_limit_bytes=limit_cap),
    )(x.reshape(N, C, HW))

    # ---- phase 2: KxK conv (2 -> 1 channels) + sigmoid on the pooled maps
    nbc = _pick_conv_tiles(N, H, W, pad, budget, n_tc)
    return pl.pallas_call(
        _make_conv_sigmoid_kernel(K, pad),
        out_shape=jax.ShapeDtypeStruct((N, 1, H, W), jnp.float32),
        grid=(pl.cdiv(N, nbc),),
        in_specs=[
            pl.BlockSpec(memory_space=pltpu.MemorySpace.SMEM),           # weights
            pl.BlockSpec((nbc, 2, H, W), lambda n: (n, 0, 0, 0)),
        ],
        out_specs=pl.BlockSpec((nbc, 1, H, W), lambda n: (n, 0, 0, 0)),
        compiler_params=pltpu.CompilerParams(
            dimension_semantics=("parallel",),
            vmem_limit_bytes=limit_cap),
    )(w_flat, am.reshape(N, 2, H, W))


def spatial_attention_ref(x, conv_weight):
    """Pure-JAX reference mirroring the PyTorch forward."""
    pad = conv_weight.shape[-1] // 2
    avg_out = jnp.mean(x, axis=1, keepdims=True)
    max_out = jnp.max(x, axis=1, keepdims=True)
    cat = jnp.concatenate([avg_out, max_out], axis=1)          # (N, 2, H, W)
    y = lax.conv_general_dilated(
        cat, conv_weight, window_strides=(1, 1),
        padding=((pad, pad), (pad, pad)),
        dimension_numbers=("NCHW", "OIHW", "NCHW"))
    return jax.nn.sigmoid(y)


if __name__ == "__main__":
    key = jax.random.PRNGKey(0)
    kx, kw, kx2 = jax.random.split(key, 3)

    # Conv2d(2, 1, 7, padding=3, bias=False) weight
    conv_weight = (jax.random.normal(kw, (1, 2, KERNEL_SIZE, KERNEL_SIZE),
                                     dtype=jnp.float32) * 0.1)

    # Case 1: primary small shape
    N, C, H, W = 2, 4, 16, 16
    x = jax.random.normal(kx, (N, C, H, W), dtype=jnp.float32)
    out = jax.block_until_ready(spatial_attention(x, conv_weight))
    ref = spatial_attention_ref(x, conv_weight)
    assert out.shape == (N, 1, H, W)
    assert jnp.allclose(out, ref, atol=2e-5, rtol=1e-5), "mismatch vs reference (case 1)"

    # Case 2: C >= 8 (vector sublane-reduce path + channel tail), H not a
    # multiple of 8, odd batch (exercises cdiv tail blocks on 2-TC parts).
    N2, C2, H2, W2 = 3, 12, 12, 20
    x2 = jax.random.normal(kx2, (N2, C2, H2, W2), dtype=jnp.float32)
    out2 = jax.block_until_ready(spatial_attention(x2, conv_weight))
    ref2 = spatial_attention_ref(x2, conv_weight)
    assert out2.shape == (N2, 1, H2, W2)
    assert jnp.allclose(out2, ref2, atol=2e-5, rtol=1e-5), "mismatch vs reference (case 2)"

    print("KERNEL_OK")
</pallas_src>

<mosaic_0001>
module attributes {stable_mosaic.version = 11 : i64} {
  func.func @kernel(%arg0: i32, %arg1: i32, %arg2: memref<2x4x256xf32, #tpu.memory_space<vmem>>, %arg3: memref<2x2x256xf32, #tpu.memory_space<vmem>>) attributes {dimension_semantics = [#tpu.dimension_semantics<parallel>, #tpu.dimension_semantics<parallel>], iteration_bounds = array<i64: 1, 1>, scalar_prefetch = 0 : i64, scratch_operands = 0 : i64, tpu.core_type = #tpu.core_type<tc>, window_params = [{transform_indices = @transform_0, window_bounds = array<i64: 2, 4, 256>}, {transform_indices = @transform_1, window_bounds = array<i64: 2, 2, 256>}]} {
    %c0 = arith.constant 0 : index
    %c0_0 = arith.constant 0 : index
    %c0_1 = arith.constant 0 : index
    %0 = vector.load %arg2[%c0, %c0_0, %c0_1] : memref<2x4x256xf32, #tpu.memory_space<vmem>>, vector<2x1x256xf32>
    %1 = vector.shape_cast %0 : vector<2x1x256xf32> to vector<2x256xf32>
    %c0_2 = arith.constant 0 : index
    %c1 = arith.constant 1 : index
    %c0_3 = arith.constant 0 : index
    %2 = vector.load %arg2[%c0_2, %c1, %c0_3] : memref<2x4x256xf32, #tpu.memory_space<vmem>>, vector<2x1x256xf32>
    %3 = vector.shape_cast %2 : vector<2x1x256xf32> to vector<2x256xf32>
    %4 = arith.addf %1, %3 : vector<2x256xf32>
    %5 = arith.maximumf %1, %3 : vector<2x256xf32>
    %c0_4 = arith.constant 0 : index
    %c2 = arith.constant 2 : index
    %c0_5 = arith.constant 0 : index
    %6 = vector.load %arg2[%c0_4, %c2, %c0_5] : memref<2x4x256xf32, #tpu.memory_space<vmem>>, vector<2x1x256xf32>
    %7 = vector.shape_cast %6 : vector<2x1x256xf32> to vector<2x256xf32>
    %8 = arith.addf %4, %7 : vector<2x256xf32>
    %9 = arith.maximumf %5, %7 : vector<2x256xf32>
    %c0_6 = arith.constant 0 : index
    %c3 = arith.constant 3 : index
    %c0_7 = arith.constant 0 : index
    %10 = vector.load %arg2[%c0_6, %c3, %c0_7] : memref<2x4x256xf32, #tpu.memory_space<vmem>>, vector<2x1x256xf32>
    %11 = vector.shape_cast %10 : vector<2x1x256xf32> to vector<2x256xf32>
    %12 = arith.addf %8, %11 : vector<2x256xf32>
    %13 = arith.maximumf %9, %11 : vector<2x256xf32>
    %cst = arith.constant 2.500000e-01 : f32
    %14 = vector.broadcast %cst : f32 to vector<2x256xf32>
    %15 = arith.mulf %12, %14 : vector<2x256xf32>
    %c0_8 = arith.constant 0 : index
    %c0_9 = arith.constant 0 : index
    %c0_10 = arith.constant 0 : index
    %16 = vector.load %arg3[%c0_8, %c0_9, %c0_10] : memref<2x2x256xf32, #tpu.memory_space<vmem>>, vector<2x1x256xf32>
    %17 = vector.shape_cast %16 : vector<2x1x256xf32> to vector<2x256xf32>
    %18 = vector.shape_cast %15 : vector<2x256xf32> to vector<2x1x256xf32>
    tpu.vector_store %arg3[%c0_8, %c0_9, %c0_10], %18 {strides = array<i32>} : memref<2x2x256xf32, #tpu.memory_space<vmem>>, vector<2x1x256xf32>,
    %c0_11 = arith.constant 0 : index
    %c1_12 = arith.constant 1 : index
    %c0_13 = arith.constant 0 : index
    %19 = vector.load %arg3[%c0_11, %c1_12, %c0_13] : memref<2x2x256xf32, #tpu.memory_space<vmem>>, vector<2x1x256xf32>
    %20 = vector.shape_cast %19 : vector<2x1x256xf32> to vector<2x256xf32>
    %21 = vector.shape_cast %13 : vector<2x256xf32> to vector<2x1x256xf32>
    tpu.vector_store %arg3[%c0_11, %c1_12, %c0_13], %21 {strides = array<i32>} : memref<2x2x256xf32, #tpu.memory_space<vmem>>, vector<2x1x256xf32>,
    return
  }
  func.func @transform_0(%arg0: i32, %arg1: i32) -> (i32, i32, i32) {
    %c0_i32 = arith.constant 0 : i32
    %c0_i32_0 = arith.constant 0 : i32
    return %arg0, %c0_i32, %arg1 : i32, i32, i32
  }
  func.func @transform_1(%arg0: i32, %arg1: i32) -> (i32, i32, i32) {
    %c0_i32 = arith.constant 0 : i32
    %c0_i32_0 = arith.constant 0 : i32
    return %arg0, %c0_i32, %arg1 : i32, i32, i32
  }
}

</mosaic_0001>

<bundles_post_ra>
// kernel: tpu_custom_call.1
= control target key start
LH: loop header
LB: loop body
LE: loop exit
PB: predicated region body
PF: predicated region fallthrough
CT: control target
= control target key end

     0   :  { %6 = vsyncpa [#allocation3], 0  ;;  %s186_s0 = inlined_call_operand.hbm [shape: f32[2,4,256], index: 0, kind: input, shape index: {}]   ;;  %s187_s1 = inlined_call_operand.hbm [shape: f32[2,2,256], index: 1, kind: output, shape index: {}]  }
   0x1   :  { %7 = vsyncpa [#allocation4], 0  ;;  %s134_s6 = smov [#allocation2]   ;;  %s86_s10 = scalar_lea.hbm %s186_s0, 256 }
   0x2   :  { %s13_s7 = sshll.u32 %s134_s6, 4  ;;  %p87_p0 = scmp.ne.s32.totalorder %s186_s0, %s86_s10  ;;  %s14_s7 = int_to_ptr.vmem [resolvable:$true] %s13_s7 }
   0x3   :  { %p90_p1 = scmp.lt.u32.totalorder %s86_s10, %s186_s0 }
   0x5   :  { %p92_p2 = pnand %p90_p1, %p87_p0 }
   0x7   :  { %95 = shalt.err (!%p92_p2)
}
   0x8   :  { %s96_s15 = scalar_lea.vmem %s14_s7, 256  ;;  %p101_p4 = scmp.lt.s32.totalorder %s14_s7, %s14_s7 }
   0x9   :  { %p97_p3 = scmp.ne.s32.totalorder %s14_s7, %s96_s15  ;;  %p102_p5 = scmp.lt.s32.totalorder %s96_s15, %s96_s15 }
   0xb   :  { %p103_p6 = por %p102_p5, %p101_p4 }
   0xd   :  { %p104_p7 = pnand %p103_p6, %p97_p3 }
   0xf   :  { %107 = shalt.err (!%p104_p7)
}
  0x10   :  { %s135_s16 = smov 128   ;;  %s136_s17 = smov 8  }
  0x11   :  { %19 = dma.hbm_to_vmem [thread:$0]  %s186_s0, 256, %s14_s7, [#allocation3], %s135_s16, %s135_s16, %s136_s17  }
  0x12   :  { %130 = dma.done.wait [#allocation3], 256  }
  0x13   :  { %131 = vsyncadd [#allocation3], 4294967040  ;;  %v23_v0 = vld [vmem:[#allocation2] ss:$4 sm:$0x3]  ;;  %v52_v2 = vlaneseq  ;;  %s137_s0 = smov [#allocation5]  }
  0x14   :  { %v27_v1 = vld [vmem:[#allocation2 + $0x1] ss:$4 sm:$0x3]  ;;  %v35_v4 = vld [vmem:[#allocation2 + $0x2] ss:$4 sm:$0x3] }
  0x15   :  { %v30_v3 = vadd.f32 %v27_v1, %v23_v0  ;;  %v43_v5 = vld [vmem:[#allocation2 + $0x3] ss:$4 sm:$0x3]  ;;  %v32_v6 = vmax.f32 %v23_v0, %v27_v1  ;;  %v25_v7 = vld [vmem:[#allocation2 + $0x8] ss:$4 sm:$0x3] }
  0x16   :  { %v29_v8 = vld [vmem:[#allocation2 + $0x9] ss:$4 sm:$0x3]  ;;  %v37_v11 = vld [vmem:[#allocation2 + $0xa] ss:$4 sm:$0x3] }
  0x17   :  { %v38_v9 = vadd.f32 %v35_v4, %v30_v3  ;;  %v31_v10 = vadd.f32 %v29_v8, %v25_v7  ;;  %v40_v12 = vmax.f32 %v32_v6, %v35_v4  ;;  %v33_v13 = vmax.f32 %v25_v7, %v29_v8  ;;  %v45_v15 = vld [vmem:[#allocation2 + $0xb] ss:$4 sm:$0x3]  ;;  %s68_s20 = sshll.u32 %s137_s0, 4  ;;  %s69_s20 = int_to_ptr.vmem [resolvable:$true] %s68_s20 }
  0x18   :  { %vm162_vm0 = vcmp.lt.s32.totalorder %v52_v2, 256  ;;  %s108_s21 = scalar_lea.vmem %s69_s20, 128  ;;  %p113_p9 = scmp.lt.s32.totalorder %s69_s20, %s69_s20 }
  0x19   :  { %v46_v16 = vadd.f32 %v43_v5, %v38_v9  ;;  %v39_v17 = vadd.f32 %v37_v11, %v31_v10  ;;  %v48_v18 = vmax.f32 %v40_v12, %v43_v5  ;;  %v41_v19 = vmax.f32 %v33_v13, %v37_v11  ;;  %p109_p8 = scmp.ne.s32.totalorder %s69_s20, %s108_s21  ;;  %p114_p10 = scmp.lt.s32.totalorder %s108_s21, %s108_s21 }
  0x1b   :  { %v50_v20 = vmul.f32 0.25, %v46_v16  ;;  %v47_v21 = vadd.f32 %v45_v15, %v39_v17  ;;  %60 = vst.msk [vmem:[#allocation5 + $0x1] ss:$2 sm:$0x3] %vm162_vm0, %v48_v18  ;;  %v49_v22 = vmax.f32 %v41_v19, %v45_v15  ;;  %p115_p11 = por %p114_p10, %p113_p9 }
  0x1d   :  { %56 = vst.msk [vmem:[#allocation5] ss:$2 sm:$0x3] %vm162_vm0, %v50_v20  ;;  %v51_v23 = vmul.f32 0.25, %v47_v21  ;;  %p116_p12 = pnand %p115_p11, %p109_p8 }
  0x1e   :  { %62 = vst.msk [vmem:[#allocation5 + $0x5] ss:$2 sm:$0x3] %vm162_vm0, %v49_v22 }
  0x1f   :  { %58 = vst.msk [vmem:[#allocation5 + $0x4] ss:$2 sm:$0x3] %vm162_vm0, %v51_v23 }
  0x20   :  { %119 = shalt.err (!%p116_p12)
}
  0x21   :  { %s120_s24 = scalar_lea.hbm %s187_s1, 128 }
  0x22   :  { %p121_p13 = scmp.ne.s32.totalorder %s187_s1, %s120_s24  ;;  %p124_p0 = scmp.lt.u32.totalorder %s120_s24, %s187_s1 }
  0x24   :  { %p126_p1 = pnand %p124_p0, %p121_p13 }
  0x26   :  { %129 = shalt.err (!%p126_p1)
}
  0x27   :  { %s138_s29 = smov 64   ;;  %s139_s30 = smov 4  }
  0x28   :  { %74 = dma.vmem_to_hbm [thread:$0]  %s69_s20, 128, %s187_s1, [#allocation4], %s138_s29, %s138_s29, %s139_s30  }
  0x29   :  { %132 = dma.done.wait [#allocation4], 128  }
  0x2a   :  { %133 = vsyncadd [#allocation4], 4294967168 }
  0x2b   :  { %78 = vsyncpa [#allocation3], 1 }
  0x2c   :  { %79 = vsyncpa [#allocation4], 1 }

</bundles_post_ra>
